<compile_context>
chip_gen: v7x
topology: tpu7x:2x2x1
jax: 0.10.0
libtpu: 0.0.40
codegen_flags: <defaults>
</compile_context>

<pallas_src>
import jax
import jax.numpy as jnp
from jax.experimental import pallas as pl
from jax.experimental.pallas import tpu as pltpu

LATENT_DIM = 4
NOISE_DIM = 4
HIDDEN_DIM = 16
MAX_TILE_B = 4096      # batch rows per grid step; ~12 MiB VMEM at this size


def _round_up(x, m):
    return ((x + m - 1) // m) * m


def _transition_kernel(latent_ref, noise_ref, w1_lat_ref, w1_noise_ref,
                       b1_ref, w2_ref, b2_ref, out_ref):
    # Layer 1: split matmul replaces torch.cat([latent, noise], -1) @ W1.
    h = jnp.dot(latent_ref[...], w1_lat_ref[...],
                preferred_element_type=jnp.float32)
    h = h + jnp.dot(noise_ref[...], w1_noise_ref[...],
                    preferred_element_type=jnp.float32)
    h = jnp.maximum(h + b1_ref[...], 0.0)          # b1 is (1, 16), broadcasts

    # Layer 2 straight into the narrow (tile_b, 4) output block.
    y = jnp.dot(h, w2_ref[...], preferred_element_type=jnp.float32)
    out_ref[...] = (y + b2_ref[...]).astype(out_ref.dtype)


def simple_transition_model(latent, noise, params):
    """latent: (B, LATENT_DIM), noise: (B, NOISE_DIM) -> (B, LATENT_DIM)."""
    w1, b1, w2, b2 = params        # w1:(8,16) b1:(1,16) w2:(16,4) b2:(1,4)
    batch = latent.shape[0]

    # Split W1 so the kernel never concatenates along the lane axis.
    w1_lat = w1[:LATENT_DIM]
    w1_noise = w1[LATENT_DIM:]

    # Tile selection: multiple of 8 sublanes, large enough to amortize the
    # ~0.35 us per-grid-step overhead, but aiming for >= 2 grid steps when the
    # batch allows so both v7x TensorCores get work.
    half = -(-batch // 2)                          # ceil(batch / 2)
    tile_b = min(MAX_TILE_B, _round_up(max(half, 1), 8))
    grid = (pl.cdiv(batch, tile_b),)               # ragged last block is fine

    out = pl.pallas_call(
        _transition_kernel,
        out_shape=jax.ShapeDtypeStruct((batch, LATENT_DIM), jnp.float32),
        grid_spec=pltpu.PrefetchScalarGridSpec(
            num_scalar_prefetch=0,
            grid=grid,
            in_specs=[
                # Batch-tiled activations (last dim == full array dim).
                pl.BlockSpec((tile_b, LATENT_DIM), lambda i: (i, 0)),
                pl.BlockSpec((tile_b, NOISE_DIM), lambda i: (i, 0)),
                # Weights / biases: constant block index -> resident in VMEM.
                pl.BlockSpec((LATENT_DIM, HIDDEN_DIM), lambda i: (0, 0)),
                pl.BlockSpec((NOISE_DIM, HIDDEN_DIM), lambda i: (0, 0)),
                pl.BlockSpec((1, HIDDEN_DIM), lambda i: (0, 0)),
                pl.BlockSpec((HIDDEN_DIM, LATENT_DIM), lambda i: (0, 0)),
                pl.BlockSpec((1, LATENT_DIM), lambda i: (0, 0)),
            ],
            out_specs=pl.BlockSpec((tile_b, LATENT_DIM), lambda i: (i, 0)),
        ),
        compiler_params=pltpu.CompilerParams(
            dimension_semantics=("parallel",),
            vmem_limit_bytes=32 << 20,
        ),
    )(latent, noise, w1_lat, w1_noise, b1, w2, b2)

    return out


def init_params(key):
    """Deterministic parameter init (shapes follow the nn.Module __init__)."""
    k1, k2, k3, k4 = jax.random.split(key, 4)
    in_dim = LATENT_DIM + NOISE_DIM
    # Stored as (in_features, out_features); biases kept 2-D for clean layout.
    w1 = jax.random.normal(k1, (in_dim, HIDDEN_DIM), jnp.float32) * 0.1
    b1 = jax.random.normal(k2, (1, HIDDEN_DIM), jnp.float32) * 0.1
    w2 = jax.random.normal(k3, (HIDDEN_DIM, LATENT_DIM), jnp.float32) * 0.1
    b2 = jax.random.normal(k4, (1, LATENT_DIM), jnp.float32) * 0.1
    return w1, b1, w2, b2


def reference_forward(latent, noise, params):
    """Pure-JAX reference for correctness check."""
    w1, b1, w2, b2 = params
    x = jnp.concatenate([latent, noise], axis=-1)
    h = jnp.maximum(x @ w1 + b1, 0.0)
    return h @ w2 + b2


if __name__ == "__main__":
    key = jax.random.PRNGKey(0)
    k_lat, k_noise, k_params = jax.random.split(key, 3)

    batch = 2
    latent = jax.random.normal(k_lat, (batch, LATENT_DIM), jnp.float32)
    noise = jax.random.normal(k_noise, (batch, NOISE_DIM), jnp.float32)
    params = init_params(k_params)

    out = simple_transition_model(latent, noise, params)
    out = jax.block_until_ready(out)

    ref = reference_forward(latent, noise, params)
    assert out.shape == (batch, LATENT_DIM)
    assert jnp.allclose(out, ref, atol=1e-5, rtol=1e-5)

    # Also exercise the multi-step grid with a ragged last block (1037 rows ->
    # tile_b = 520, grid = 2, last block partial).
    big = 1037
    k_bl, k_bn = jax.random.split(key, 2)
    b_lat = jax.random.normal(k_bl, (big, LATENT_DIM), jnp.float32)
    b_noise = jax.random.normal(k_bn, (big, NOISE_DIM), jnp.float32)
    big_out = jax.block_until_ready(simple_transition_model(b_lat, b_noise, params))
    big_ref = reference_forward(b_lat, b_noise, params)
    assert big_out.shape == (big, LATENT_DIM)
    assert jnp.allclose(big_out, big_ref, atol=1e-5, rtol=1e-5)

    print("KERNEL_OK")
</pallas_src>

<mosaic_0001>
module attributes {stable_mosaic.version = 11 : i64} {
  func.func @_transition_kernel(%arg0: i32, %arg1: memref<8x4xf32, #tpu.memory_space<vmem>>, %arg2: memref<8x4xf32, #tpu.memory_space<vmem>>, %arg3: memref<4x16xf32, #tpu.memory_space<vmem>>, %arg4: memref<4x16xf32, #tpu.memory_space<vmem>>, %arg5: memref<1x16xf32, #tpu.memory_space<vmem>>, %arg6: memref<16x4xf32, #tpu.memory_space<vmem>>, %arg7: memref<1x4xf32, #tpu.memory_space<vmem>>, %arg8: memref<8x4xf32, #tpu.memory_space<vmem>>) attributes {dimension_semantics = [#tpu.dimension_semantics<parallel>], iteration_bounds = array<i64: 1>, scalar_prefetch = 0 : i64, scratch_operands = 0 : i64, tpu.core_type = #tpu.core_type<tc>, window_params = [{transform_indices = @transform_0, window_bounds = array<i64: 8, 4>}, {transform_indices = @transform_1, window_bounds = array<i64: 8, 4>}, {pipeline_mode = #tpu.pipeline_mode<synchronous>, transform_indices = @transform_2, window_bounds = array<i64: 4, 16>}, {pipeline_mode = #tpu.pipeline_mode<synchronous>, transform_indices = @transform_3, window_bounds = array<i64: 4, 16>}, {pipeline_mode = #tpu.pipeline_mode<synchronous>, transform_indices = @transform_4, window_bounds = array<i64: 1, 16>}, {pipeline_mode = #tpu.pipeline_mode<synchronous>, transform_indices = @transform_5, window_bounds = array<i64: 16, 4>}, {pipeline_mode = #tpu.pipeline_mode<synchronous>, transform_indices = @transform_6, window_bounds = array<i64: 1, 4>}, {transform_indices = @transform_7, window_bounds = array<i64: 8, 4>}]} {
    %c0 = arith.constant 0 : index
    %c0_0 = arith.constant 0 : index
    %0 = vector.load %arg1[%c0, %c0_0] : memref<8x4xf32, #tpu.memory_space<vmem>>, vector<8x4xf32>
    %c0_1 = arith.constant 0 : index
    %c0_2 = arith.constant 0 : index
    %1 = vector.load %arg3[%c0_1, %c0_2] : memref<4x16xf32, #tpu.memory_space<vmem>>, vector<4x16xf32>
    %cst = arith.constant dense<0.000000e+00> : vector<8x16xf32>
    %2 = tpu.matmul %0, %1, %cst {dimension_numbers = #tpu.dot_dimension_numbers<[1], [0], [0], [1], [0, 0, 1, 1], [], []>} : vector<8x4xf32>, vector<4x16xf32>, vector<8x16xf32> -> vector<8x16xf32>
    %c0_3 = arith.constant 0 : index
    %c0_4 = arith.constant 0 : index
    %3 = vector.load %arg2[%c0_3, %c0_4] : memref<8x4xf32, #tpu.memory_space<vmem>>, vector<8x4xf32>
    %c0_5 = arith.constant 0 : index
    %c0_6 = arith.constant 0 : index
    %4 = vector.load %arg4[%c0_5, %c0_6] : memref<4x16xf32, #tpu.memory_space<vmem>>, vector<4x16xf32>
    %cst_7 = arith.constant dense<0.000000e+00> : vector<8x16xf32>
    %5 = tpu.matmul %3, %4, %cst_7 {dimension_numbers = #tpu.dot_dimension_numbers<[1], [0], [0], [1], [0, 0, 1, 1], [], []>} : vector<8x4xf32>, vector<4x16xf32>, vector<8x16xf32> -> vector<8x16xf32>
    %6 = arith.addf %2, %5 : vector<8x16xf32>
    %c0_8 = arith.constant 0 : index
    %c0_9 = arith.constant 0 : index
    %7 = vector.load %arg5[%c0_8, %c0_9] : memref<1x16xf32, #tpu.memory_space<vmem>>, vector<1x16xf32>
    %8 = vector.broadcast %7 : vector<1x16xf32> to vector<8x16xf32>
    %9 = arith.addf %6, %8 : vector<8x16xf32>
    %cst_10 = arith.constant 0.000000e+00 : f32
    %10 = vector.broadcast %cst_10 : f32 to vector<8x16xf32>
    %11 = arith.maximumf %9, %10 : vector<8x16xf32>
    %c0_11 = arith.constant 0 : index
    %c0_12 = arith.constant 0 : index
    %12 = vector.load %arg6[%c0_11, %c0_12] : memref<16x4xf32, #tpu.memory_space<vmem>>, vector<16x4xf32>
    %cst_13 = arith.constant dense<0.000000e+00> : vector<8x4xf32>
    %13 = tpu.matmul %11, %12, %cst_13 {dimension_numbers = #tpu.dot_dimension_numbers<[1], [0], [0], [1], [0, 0, 1, 1], [], []>} : vector<8x16xf32>, vector<16x4xf32>, vector<8x4xf32> -> vector<8x4xf32>
    %c0_14 = arith.constant 0 : index
    %c0_15 = arith.constant 0 : index
    %14 = vector.load %arg7[%c0_14, %c0_15] : memref<1x4xf32, #tpu.memory_space<vmem>>, vector<1x4xf32>
    %15 = vector.broadcast %14 : vector<1x4xf32> to vector<8x4xf32>
    %16 = arith.addf %13, %15 : vector<8x4xf32>
    %c0_16 = arith.constant 0 : index
    %c0_17 = arith.constant 0 : index
    %17 = vector.load %arg8[%c0_16, %c0_17] : memref<8x4xf32, #tpu.memory_space<vmem>>, vector<8x4xf32>
    tpu.vector_store %arg8[%c0_16, %c0_17], %16 {strides = array<i32>} : memref<8x4xf32, #tpu.memory_space<vmem>>, vector<8x4xf32>,
    return
  }
  func.func @transform_0(%arg0: i32) -> (i32, i32) {
    %c0_i32 = arith.constant 0 : i32
    %c0_i32_0 = arith.constant 0 : i32
    return %arg0, %c0_i32 : i32, i32
  }
  func.func @transform_1(%arg0: i32) -> (i32, i32) {
    %c0_i32 = arith.constant 0 : i32
    %c0_i32_0 = arith.constant 0 : i32
    return %arg0, %c0_i32 : i32, i32
  }
  func.func @transform_2(%arg0: i32) -> (i32, i32) {
    %c0_i32 = arith.constant 0 : i32
    %c0_i32_0 = arith.constant 0 : i32
    %c0_i32_1 = arith.constant 0 : i32
    return %c0_i32, %c0_i32_0 : i32, i32
  }
  func.func @transform_3(%arg0: i32) -> (i32, i32) {
    %c0_i32 = arith.constant 0 : i32
    %c0_i32_0 = arith.constant 0 : i32
    %c0_i32_1 = arith.constant 0 : i32
    return %c0_i32, %c0_i32_0 : i32, i32
  }
  func.func @transform_4(%arg0: i32) -> (i32, i32) {
    %c0_i32 = arith.constant 0 : i32
    %c0_i32_0 = arith.constant 0 : i32
    %c0_i32_1 = arith.constant 0 : i32
    return %c0_i32, %c0_i32_0 : i32, i32
  }
  func.func @transform_5(%arg0: i32) -> (i32, i32) {
    %c0_i32 = arith.constant 0 : i32
    %c0_i32_0 = arith.constant 0 : i32
    %c0_i32_1 = arith.constant 0 : i32
    return %c0_i32, %c0_i32_0 : i32, i32
  }
  func.func @transform_6(%arg0: i32) -> (i32, i32) {
    %c0_i32 = arith.constant 0 : i32
    %c0_i32_0 = arith.constant 0 : i32
    %c0_i32_1 = arith.constant 0 : i32
    return %c0_i32, %c0_i32_0 : i32, i32
  }
  func.func @transform_7(%arg0: i32) -> (i32, i32) {
    %c0_i32 = arith.constant 0 : i32
    %c0_i32_0 = arith.constant 0 : i32
    return %arg0, %c0_i32 : i32, i32
  }
}

</mosaic_0001>

<bundles_post_ra>
// kernel: tpu_custom_call.1
= control target key start
LH: loop header
LB: loop body
LE: loop exit
PB: predicated region body
PF: predicated region fallthrough
CT: control target
= control target key end

     0   :  { %12 = vsyncpa [#allocation3], 0  ;;  %vm35_vm0 = vcmask 1043456   ;;  %v358_v1 = vmov 0.0   ;;  %vm31_vm1 = vcmask 31744   ;;  %vm359_vm2 = vmmov 0   ;;  %s443_s0 = inlined_call_operand.vmem [shape: f32[2,4], index: 0, kind: input, shape index: {}]   ;;  %s444_s1 = inlined_call_operand.vmem [shape: f32[2,4], index: 1, kind: input, shape index: {}]   ;;  %s445_s2 = inlined_call_operand.vmem [shape: f32[4,16], index: 2, kind: input, shape index: {}]   ;;  %s446_s3 = inlined_call_operand.vmem [shape: f32[4,16], index: 3, kind: input, shape index: {}]   ;;  %s447_s4 = inlined_call_operand.vmem [shape: f32[1,16], index: 4, kind: input, shape index: {}]   ;;  %s448_s5 = inlined_call_operand.vmem [shape: f32[16,4], index: 5, kind: input, shape index: {}]   ;;  %s449_s6 = inlined_call_operand.vmem [shape: f32[1,4], index: 6, kind: input, shape index: {}]   ;;  %s450_s7 = inlined_call_operand.hbm [shape: f32[2,4], index: 7, kind: output, shape index: {}]  }
   0x1   :  { %v30_v0 = vld [vmem:[%s446_s3] sm:$0xf]  ;;  %308 = vmatprep.subr.mxu0 %v358_v1  ;;  %313 = vmatprep.subr.mxu1 %v358_v1  ;;  %v195_v6 = vld [vmem:[%s448_s5 + $0x8] sm:$0xff]  ;;  %v360_v8 = vmov 0.0|0.0   ;;  %vm203_vm3 = vcmask 130048  }
   0x2   :  { %v28_v2 = vld [vmem:[%s445_s2] sm:$0xf]  ;;  %309 = vmatpush3.msk.msra.mxu0 %vm35_vm0, %v30_v0  ;;  %310 = vmatprep.mubr.msk.f32.mxu0 %vm359_vm2, %v358_v1 }
   0x3   :  { %v29_v3 = vld [vmem:[%s444_s1] sm:$0xff]  ;;  %314 = vmatpush3.msk.msra.mxu1 %vm35_vm0, %v28_v2  ;;  %315 = vmatprep.mubr.msk.f32.mxu1 %vm359_vm2, %v358_v1 }
   0x4   :  { %v27_v4 = vld [vmem:[%s443_s0] sm:$0xff]  ;;  %311 = vmatmul.mubr.msk.f32.vlgmr.msra.gmra.mrb[0].mxu0 %vm31_vm1, %v29_v3  ;;  %325 = vmatprep.subr.bf16.mxu0 %v360_v8 }
   0x5   :  { %316 = vmatmul.mubr.msk.f32.vlgmr.msra.gmra.mrb[0].mxu1 %vm31_vm1, %v27_v4  ;;  %322 = vmatprep.mubr.msk.f32.mxu0 %vm359_vm2, %v358_v1  ;;  %v194_v5 = vld [vmem:[%s448_s5] sm:$0xff] }
   0x6   :  { %v326_v7 = vpack.c.bf16 %v195_v6, %v194_v5  ;;  %v298_v11 = vld [vmem:[%s447_s4] ss:$0 sm:$0xff] }
   0x7   :  { %v299_v17 = vld [vmem:[%s449_s6] ss:$0 sm:$0xff] }
   0x8   :  { %327 = vmatpush3.bf16.msra.mxu0 %v326_v7 }
  0xd7   :  { %v105_v9 = vpop.f32.mrb[0].mxu0 }
  0xd8   :  { %v181_v10 = vpop.f32.mrb[0].mxu1  ;;  %v312_v13 = vpop.f32.mrb[1].mxu0 }
  0xd9   :  { %v182_v12 = vadd.f32 %v181_v10, %v105_v9  ;;  %v317_v14 = vpop.f32.mrb[1].mxu1 }
  0xdb   :  { %v192_v15 = vadd.f32 %v298_v11, %v182_v12 }
  0xdd   :  { %v193_v16 = vmax.f32 %v192_v15, 0.0 }
  0xdf   :  { %323 = vmatmul.mubr.msk.f32.vlgmr.msra.gmra.mrb[2].mxu0 %vm203_vm3, %v193_v16 }
 0x1b2   :  { %v273_v18 = vpop.f32.mrb[2].mxu0 }
 0x1b3   :  { %v274_v19 = vadd.f32 %v299_v17, %v273_v18  ;;  %v324_v20 = vpop.f32.mrb[3].mxu0 }
 0x1b5   :  { %277 = vst.msk [vmem:[#allocation2] sm:$0xff] %vm31_vm1, %v274_v19 }
 0x1b6   :  { %282 = vsyncadd [#allocation3], 96  ;;  %s361_s5 = smov [#allocation2]  }
 0x1b7   :  { %s283_s13 = sshll.u32 %s361_s5, 4  ;;  %s284_s13 = int_to_ptr.vmem [resolvable:$true] %s283_s13 }
 0x1b8   :  { %s334_s4 = scalar_lea.vmem %s284_s13, 32  ;;  %s338_s14 = scalar_lea.vmem %s284_s13, 128 }
 0x1b9   :  { %p335_p0 = scmp.ne.s32.totalorder %s284_s13, %s334_s4  ;;  %p339_p1 = scmp.lt.s32.totalorder %s284_s13, %s284_s13 }
 0x1ba   :  { %p340_p2 = scmp.lt.s32.totalorder %s338_s14, %s334_s4 }
 0x1bc   :  { %p341_p3 = por %p340_p2, %p339_p1 }
 0x1be   :  { %p342_p4 = pnand %p341_p3, %p335_p0 }
 0x1c0   :  { %345 = shalt.err (!%p342_p4)
}
 0x1c1   :  { %s346_s6 = scalar_lea.hbm %s450_s7, 32 }
 0x1c2   :  { %p347_p5 = scmp.ne.s32.totalorder %s450_s7, %s346_s6  ;;  %p350_p6 = scmp.lt.u32.totalorder %s346_s6, %s450_s7 }
 0x1c4   :  { %p352_p7 = pnand %p350_p6, %p347_p5 }
 0x1c6   :  { %355 = shalt.err (!%p352_p7)
}
 0x1c7   :  { %s362_s21 = smov 32   ;;  %s363_s22 = smov 2  }
 0x1c8   :  { %289 = dma.vmem_to_hbm [thread:$0]  %s284_s13, 32, %s450_s7, [#allocation3], %s362_s21, %s362_s21, %s363_s22  }
 0x1c9   :  { %356 = dma.done.wait [#allocation3], 128  }
 0x1ca   :  { %357 = vsyncadd [#allocation3], 4294967168 }
 0x1cb   :  { %293 = vsyncpa [#allocation3], 1 }

</bundles_post_ra>
